<compile_context>
chip_gen: v5e
topology: v5e:2x2
jax: 0.10.0
libtpu: 0.0.40
codegen_flags: <defaults>
</compile_context>

<pallas_src>
import math

import jax
import jax.numpy as jnp
from jax.experimental import pallas as pl
from jax.experimental.pallas import tpu as pltpu

_LANE = 128


def _round_up(x, m):
    return ((x + m - 1) // m) * m


def _classification_head_kernel(x_ref, w1_ref, b1_ref, w2_ref, b2_ref,
                                w3_ref, b3_ref, o_ref):
    # x_ref: (TM, D) tile of features. Weights are pre-transposed [in, out]
    # (identical math to PyTorch's x @ W.T + b with [out, in] storage).
    wdt = w1_ref.dtype
    x = x_ref[...].astype(wdt)
    # dense1 + tanh   (only matmul operands in weight dtype; rest stays f32)
    h1 = jnp.dot(x, w1_ref[...], preferred_element_type=jnp.float32) + b1_ref[...]
    h1 = jnp.tanh(h1)
    # dense2 + tanh
    h2 = jnp.dot(h1.astype(wdt), w2_ref[...],
                 preferred_element_type=jnp.float32) + b2_ref[...]
    h2 = jnp.tanh(h2)
    # out_proj
    out = jnp.dot(h2.astype(wdt), w3_ref[...],
                  preferred_element_type=jnp.float32) + b3_ref[...]
    o_ref[...] = out.astype(o_ref.dtype)


def classification_head_pallas(x, params, *, tm=512):
    """x: [B, in_dim]. params: dict with pre-transposed, lane-padded weights."""
    B, D = x.shape
    w1, b1 = params["w1"], params["b1"]
    w2, b2 = params["w2"], params["b2"]
    w3, b3 = params["w3"], params["b3"]
    out_dim = params["out_dim"]
    out_pad = w3.shape[1]

    # ---- choose a batch tile -------------------------------------------------
    tm = min(tm, B)
    if B > 256:
        # Ensure at least two grid steps so v7x's 2 TensorCores both get work.
        tm = min(tm, _round_up(pl.cdiv(B, 2), 8))
    if tm < B:
        tm = max(8, (tm // 8) * 8)

    itemsize = jnp.dtype(x.dtype).itemsize
    weight_bytes = sum(int(a.size) * jnp.dtype(a.dtype).itemsize
                       for a in (w1, b1, w2, b2, w3, b3))

    def tile_bytes(t):
        # double-buffered feature tile + double-buffered f32 output tile
        return 2 * t * D * itemsize + 2 * t * out_pad * 4

    # VMEM budget chosen to be safe on v7x (64 MiB physical, 32 MiB scoped).
    budget = 24 * 1024 * 1024
    while tm > 8 and tile_bytes(tm) + weight_bytes > budget:
        tm = max(8, (tm // 2 // 8) * 8)

    grid = (pl.cdiv(B, tm),)

    cost = pl.CostEstimate(
        flops=2 * B * (D * w1.shape[1]
                       + w2.shape[0] * w2.shape[1]
                       + w3.shape[0] * out_pad),
        transcendentals=B * (w1.shape[1] + w2.shape[1]),
        bytes_accessed=int(B * D * itemsize + B * out_pad * 4 + weight_bytes),
    )

    def build(weight_mode):
        def const_spec(a):
            # Full-array block, constant index map (never refetched).
            return pl.BlockSpec(a.shape, lambda i: (0,) * a.ndim,
                                pipeline_mode=weight_mode)

        return pl.pallas_call(
            _classification_head_kernel,
            out_shape=jax.ShapeDtypeStruct((B, out_pad), jnp.float32),
            grid_spec=pltpu.PrefetchScalarGridSpec(
                num_scalar_prefetch=0,
                grid=grid,
                in_specs=[
                    pl.BlockSpec((tm, D), lambda i: (i, 0)),   # features tile
                    const_spec(w1), const_spec(b1),
                    const_spec(w2), const_spec(b2),
                    const_spec(w3), const_spec(b3),
                ],
                out_specs=pl.BlockSpec((tm, out_pad), lambda i: (i, 0)),
            ),
            compiler_params=pltpu.CompilerParams(
                dimension_semantics=("parallel",),
                vmem_limit_bytes=32 * 1024 * 1024,
            ),
            cost_estimate=cost,
        )

    try:
        # Constant-index weights/biases: single-buffered to save VMEM.
        out = build(pl.Buffered(1))(x, w1, b1, w2, b2, w3, b3)
    except Exception:
        # Fallback to default (double) buffering if Buffered(1) is unsupported.
        out = build(None)(x, w1, b1, w2, b2, w3, b3)

    return out[:, :out_dim]


def _xavier_uniform(key, fan_in, fan_out, dtype=jnp.float32):
    # Matches nn.init.xavier_uniform_ (bound symmetric in fan_in/fan_out),
    # emitted directly in (in, out) layout.
    bound = math.sqrt(6.0 / (fan_in + fan_out))
    return jax.random.uniform(key, (fan_in, fan_out), dtype,
                              minval=-bound, maxval=bound)


def _pad2d(a, rows, cols):
    return jnp.pad(a, ((0, rows - a.shape[0]), (0, cols - a.shape[1])))


def init_classification_head_params(key, in_dim, out_dim, *,
                                    matmul_dtype=jnp.float32):
    """Weights pre-transposed to [in, out] and zero-padded to 128 lanes."""
    d1, d2 = in_dim // 4, in_dim // 16
    d1p = max(_LANE, _round_up(d1, _LANE))
    d2p = max(_LANE, _round_up(d2, _LANE))
    outp = max(_LANE, _round_up(out_dim, _LANE))
    ks = jax.random.split(key, 6)
    w1 = _pad2d(_xavier_uniform(ks[0], in_dim, d1), in_dim, d1p)
    b1 = _pad2d(1e-6 * jax.random.normal(ks[1], (1, d1)), 1, d1p)
    w2 = _pad2d(_xavier_uniform(ks[2], d1, d2), d1p, d2p)
    b2 = _pad2d(1e-6 * jax.random.normal(ks[3], (1, d2)), 1, d2p)
    w3 = _pad2d(_xavier_uniform(ks[4], d2, out_dim), d2p, outp)
    b3 = _pad2d(1e-6 * jax.random.normal(ks[5], (1, out_dim)), 1, outp)
    return {
        "w1": w1.astype(matmul_dtype), "b1": b1.astype(jnp.float32),
        "w2": w2.astype(matmul_dtype), "b2": b2.astype(jnp.float32),
        "w3": w3.astype(matmul_dtype), "b3": b3.astype(jnp.float32),
        "out_dim": out_dim,
    }


def signature_classifier_test_forward(features, params):
    """Forward pass of SIGNature_Classifier_test given embedded features q."""
    return classification_head_pallas(features, params)


def _reference_forward(x, p):
    xf = x.astype(jnp.float32)
    h1 = jnp.tanh(xf @ p["w1"].astype(jnp.float32) + p["b1"])
    h2 = jnp.tanh(h1 @ p["w2"].astype(jnp.float32) + p["b2"])
    out = h2 @ p["w3"].astype(jnp.float32) + p["b3"]
    return out[:, :p["out_dim"]]


if __name__ == "__main__":
    # Small, module-consistent shapes:
    #   opt.projection_size = 128 (so in_dim//4 = 32, in_dim//16 = 8)
    #   opt.classifier_dim  = 4
    batch = 16
    projection_size = 128
    classifier_dim = 4

    key = jax.random.PRNGKey(0)
    k_feat, k_params = jax.random.split(key)

    # `q` — output of the (not reimplemented) TextEmbeddingModel.
    q = jax.random.normal(k_feat, (batch, projection_size), dtype=jnp.float32)

    # ---- f32 path: tight check against the pure-JAX reference --------------
    params_f32 = init_classification_head_params(
        k_params, projection_size, classifier_dim, matmul_dtype=jnp.float32)
    out_f32 = jax.block_until_ready(
        signature_classifier_test_forward(q, params_f32))
    ref = _reference_forward(q, params_f32)
    assert out_f32.shape == (batch, classifier_dim)
    assert jnp.allclose(out_f32, ref, atol=1e-5, rtol=1e-5)

    # ---- bf16-operand path (bandwidth-optimized on v6e/v7x) -----------------
    params_bf16 = init_classification_head_params(
        k_params, projection_size, classifier_dim, matmul_dtype=jnp.bfloat16)
    q_bf16 = q.astype(jnp.bfloat16)
    out_bf16 = jax.block_until_ready(
        signature_classifier_test_forward(q_bf16, params_bf16))
    assert out_bf16.shape == (batch, classifier_dim)
    assert jnp.allclose(out_bf16, ref, atol=5e-2, rtol=5e-2)

    print("KERNEL_OK")
</pallas_src>

<mosaic_0001>
module attributes {stable_mosaic.version = 11 : i64} {
  func.func @_classification_head_kernel(%arg0: i32, %arg1: memref<16x128xf32, #tpu.memory_space<vmem>>, %arg2: memref<128x128xf32, #tpu.memory_space<vmem>>, %arg3: memref<1x128xf32, #tpu.memory_space<vmem>>, %arg4: memref<128x128xf32, #tpu.memory_space<vmem>>, %arg5: memref<1x128xf32, #tpu.memory_space<vmem>>, %arg6: memref<128x128xf32, #tpu.memory_space<vmem>>, %arg7: memref<1x128xf32, #tpu.memory_space<vmem>>, %arg8: memref<16x128xf32, #tpu.memory_space<vmem>>) attributes {dimension_semantics = [#tpu.dimension_semantics<parallel>], iteration_bounds = array<i64: 1>, scalar_prefetch = 0 : i64, scratch_operands = 0 : i64, tpu.core_type = #tpu.core_type<tc>, window_params = [{transform_indices = @transform_0, window_bounds = array<i64: 16, 128>}, {pipeline_mode = #tpu.pipeline_mode<synchronous>, transform_indices = @transform_1, window_bounds = array<i64: 128, 128>}, {pipeline_mode = #tpu.pipeline_mode<synchronous>, transform_indices = @transform_2, window_bounds = array<i64: 1, 128>}, {pipeline_mode = #tpu.pipeline_mode<synchronous>, transform_indices = @transform_3, window_bounds = array<i64: 128, 128>}, {pipeline_mode = #tpu.pipeline_mode<synchronous>, transform_indices = @transform_4, window_bounds = array<i64: 1, 128>}, {pipeline_mode = #tpu.pipeline_mode<synchronous>, transform_indices = @transform_5, window_bounds = array<i64: 128, 128>}, {pipeline_mode = #tpu.pipeline_mode<synchronous>, transform_indices = @transform_6, window_bounds = array<i64: 1, 128>}, {transform_indices = @transform_7, window_bounds = array<i64: 16, 128>}]} {
    %c0 = arith.constant 0 : index
    %c0_0 = arith.constant 0 : index
    %0 = vector.load %arg1[%c0, %c0_0] : memref<16x128xf32, #tpu.memory_space<vmem>>, vector<16x128xf32>
    %c0_1 = arith.constant 0 : index
    %c0_2 = arith.constant 0 : index
    %1 = vector.load %arg2[%c0_1, %c0_2] : memref<128x128xf32, #tpu.memory_space<vmem>>, vector<128x128xf32>
    %cst = arith.constant dense<0.000000e+00> : vector<16x128xf32>
    %2 = tpu.matmul %0, %1, %cst {dimension_numbers = #tpu.dot_dimension_numbers<[1], [0], [0], [1], [0, 0, 1, 1], [], []>} : vector<16x128xf32>, vector<128x128xf32>, vector<16x128xf32> -> vector<16x128xf32>
    %c0_3 = arith.constant 0 : index
    %c0_4 = arith.constant 0 : index
    %3 = vector.load %arg3[%c0_3, %c0_4] : memref<1x128xf32, #tpu.memory_space<vmem>>, vector<1x128xf32>
    %4 = vector.broadcast %3 : vector<1x128xf32> to vector<16x128xf32>
    %5 = arith.addf %2, %4 : vector<16x128xf32>
    %6 = math.tanh %5 : vector<16x128xf32>
    %c0_5 = arith.constant 0 : index
    %c0_6 = arith.constant 0 : index
    %7 = vector.load %arg4[%c0_5, %c0_6] : memref<128x128xf32, #tpu.memory_space<vmem>>, vector<128x128xf32>
    %cst_7 = arith.constant dense<0.000000e+00> : vector<16x128xf32>
    %8 = tpu.matmul %6, %7, %cst_7 {dimension_numbers = #tpu.dot_dimension_numbers<[1], [0], [0], [1], [0, 0, 1, 1], [], []>} : vector<16x128xf32>, vector<128x128xf32>, vector<16x128xf32> -> vector<16x128xf32>
    %c0_8 = arith.constant 0 : index
    %c0_9 = arith.constant 0 : index
    %9 = vector.load %arg5[%c0_8, %c0_9] : memref<1x128xf32, #tpu.memory_space<vmem>>, vector<1x128xf32>
    %10 = vector.broadcast %9 : vector<1x128xf32> to vector<16x128xf32>
    %11 = arith.addf %8, %10 : vector<16x128xf32>
    %12 = math.tanh %11 : vector<16x128xf32>
    %c0_10 = arith.constant 0 : index
    %c0_11 = arith.constant 0 : index
    %13 = vector.load %arg6[%c0_10, %c0_11] : memref<128x128xf32, #tpu.memory_space<vmem>>, vector<128x128xf32>
    %cst_12 = arith.constant dense<0.000000e+00> : vector<16x128xf32>
    %14 = tpu.matmul %12, %13, %cst_12 {dimension_numbers = #tpu.dot_dimension_numbers<[1], [0], [0], [1], [0, 0, 1, 1], [], []>} : vector<16x128xf32>, vector<128x128xf32>, vector<16x128xf32> -> vector<16x128xf32>
    %c0_13 = arith.constant 0 : index
    %c0_14 = arith.constant 0 : index
    %15 = vector.load %arg7[%c0_13, %c0_14] : memref<1x128xf32, #tpu.memory_space<vmem>>, vector<1x128xf32>
    %16 = vector.broadcast %15 : vector<1x128xf32> to vector<16x128xf32>
    %17 = arith.addf %14, %16 : vector<16x128xf32>
    %c0_15 = arith.constant 0 : index
    %c0_16 = arith.constant 0 : index
    %18 = vector.load %arg8[%c0_15, %c0_16] : memref<16x128xf32, #tpu.memory_space<vmem>>, vector<16x128xf32>
    tpu.vector_store %arg8[%c0_15, %c0_16], %17 {strides = array<i32>} : memref<16x128xf32, #tpu.memory_space<vmem>>, vector<16x128xf32>,
    return
  }
  func.func @transform_0(%arg0: i32) -> (i32, i32) {
    %c0_i32 = arith.constant 0 : i32
    %c0_i32_0 = arith.constant 0 : i32
    return %arg0, %c0_i32 : i32, i32
  }
  func.func @transform_1(%arg0: i32) -> (i32, i32) {
    %c0_i32 = arith.constant 0 : i32
    %c0_i32_0 = arith.constant 0 : i32
    %c0_i32_1 = arith.constant 0 : i32
    return %c0_i32, %c0_i32_0 : i32, i32
  }
  func.func @transform_2(%arg0: i32) -> (i32, i32) {
    %c0_i32 = arith.constant 0 : i32
    %c0_i32_0 = arith.constant 0 : i32
    %c0_i32_1 = arith.constant 0 : i32
    return %c0_i32, %c0_i32_0 : i32, i32
  }
  func.func @transform_3(%arg0: i32) -> (i32, i32) {
    %c0_i32 = arith.constant 0 : i32
    %c0_i32_0 = arith.constant 0 : i32
    %c0_i32_1 = arith.constant 0 : i32
    return %c0_i32, %c0_i32_0 : i32, i32
  }
  func.func @transform_4(%arg0: i32) -> (i32, i32) {
    %c0_i32 = arith.constant 0 : i32
    %c0_i32_0 = arith.constant 0 : i32
    %c0_i32_1 = arith.constant 0 : i32
    return %c0_i32, %c0_i32_0 : i32, i32
  }
  func.func @transform_5(%arg0: i32) -> (i32, i32) {
    %c0_i32 = arith.constant 0 : i32
    %c0_i32_0 = arith.constant 0 : i32
    %c0_i32_1 = arith.constant 0 : i32
    return %c0_i32, %c0_i32_0 : i32, i32
  }
  func.func @transform_6(%arg0: i32) -> (i32, i32) {
    %c0_i32 = arith.constant 0 : i32
    %c0_i32_0 = arith.constant 0 : i32
    %c0_i32_1 = arith.constant 0 : i32
    return %c0_i32, %c0_i32_0 : i32, i32
  }
  func.func @transform_7(%arg0: i32) -> (i32, i32) {
    %c0_i32 = arith.constant 0 : i32
    %c0_i32_0 = arith.constant 0 : i32
    return %arg0, %c0_i32 : i32, i32
  }
}

module attributes {stable_mosaic.version = 11 : i64} {
  func.func @_classification_head_kernel(%arg0: i32, %arg1: memref<16x128xf32, #tpu.memory_space<vmem>>, %arg2: memref<128x128xf32, #tpu.memory_space<vmem>>, %arg3: memref<1x128xf32, #tpu.memory_space<vmem>>, %arg4: memref<128x128xf32, #tpu.memory_space<vmem>>, %arg5: memref<1x128xf32, #tpu.memory_space<vmem>>, %arg6: memref<128x128xf32, #tpu.memory_space<vmem>>, %arg7: memref<1x128xf32, #tpu.memory_space<vmem>>, %arg8: memref<16x128xf32, #tpu.memory_space<vmem>>) attributes {dimension_semantics = [#tpu.dimension_semantics<parallel>], iteration_bounds = array<i64: 1>, scalar_prefetch = 0 : i64, scratch_operands = 0 : i64, tpu.core_type = #tpu.core_type<tc>, window_params = [{transform_indices = @transform_0, window_bounds = array<i64: 16, 128>}, {pipeline_mode = #tpu.pipeline_mode<synchronous>, transform_indices = @transform_1, window_bounds = array<i64: 128, 128>}, {pipeline_mode = #tpu.pipeline_mode<synchronous>, transform_indices = @transform_2, window_bounds = array<i64: 1, 128>}, {pipeline_mode = #tpu.pipeline_mode<synchronous>, transform_indices = @transform_3, window_bounds = array<i64: 128, 128>}, {pipeline_mode = #tpu.pipeline_mode<synchronous>, transform_indices = @transform_4, window_bounds = array<i64: 1, 128>}, {pipeline_mode = #tpu.pipeline_mode<synchronous>, transform_indices = @transform_5, window_bounds = array<i64: 128, 128>}, {pipeline_mode = #tpu.pipeline_mode<synchronous>, transform_indices = @transform_6, window_bounds = array<i64: 1, 128>}, {transform_indices = @transform_7, window_bounds = array<i64: 16, 128>}]} {
    %c0 = arith.constant 0 : index
    %c0_0 = arith.constant 0 : index
    %0 = vector.load %arg1[%c0, %c0_0] : memref<16x128xf32, #tpu.memory_space<vmem>>, vector<16x128xf32>
    %c0_1 = arith.constant 0 : index
    %c0_2 = arith.constant 0 : index
    %1 = vector.load %arg2[%c0_1, %c0_2] : memref<128x128xf32, #tpu.memory_space<vmem>>, vector<128x128xf32>
    %cst = arith.constant dense<0.000000e+00> : vector<16x128xf32>
    %2 = tpu.matmul %0, %1, %cst {dimension_numbers = #tpu.dot_dimension_numbers<[1], [0], [0], [1], [0, 0, 1, 1], [], []>} : vector<16x128xf32>, vector<128x128xf32>, vector<16x128xf32> -> vector<16x128xf32>
    %c0_3 = arith.constant 0 : index
    %c0_4 = arith.constant 0 : index
    %3 = vector.load %arg3[%c0_3, %c0_4] : memref<1x128xf32, #tpu.memory_space<vmem>>, vector<1x128xf32>
    %4 = vector.broadcast %3 : vector<1x128xf32> to vector<16x128xf32>
    %5 = arith.addf %2, %4 : vector<16x128xf32>
    %6 = math.tanh %5 : vector<16x128xf32>
    %c0_5 = arith.constant 0 : index
    %c0_6 = arith.constant 0 : index
    %7 = vector.load %arg4[%c0_5, %c0_6] : memref<128x128xf32, #tpu.memory_space<vmem>>, vector<128x128xf32>
    %cst_7 = arith.constant dense<0.000000e+00> : vector<16x128xf32>
    %8 = tpu.matmul %6, %7, %cst_7 {dimension_numbers = #tpu.dot_dimension_numbers<[1], [0], [0], [1], [0, 0, 1, 1], [], []>} : vector<16x128xf32>, vector<128x128xf32>, vector<16x128xf32> -> vector<16x128xf32>
    %c0_8 = arith.constant 0 : index
    %c0_9 = arith.constant 0 : index
    %9 = vector.load %arg5[%c0_8, %c0_9] : memref<1x128xf32, #tpu.memory_space<vmem>>, vector<1x128xf32>
    %10 = vector.broadcast %9 : vector<1x128xf32> to vector<16x128xf32>
    %11 = arith.addf %8, %10 : vector<16x128xf32>
    %12 = math.tanh %11 : vector<16x128xf32>
    %c0_10 = arith.constant 0 : index
    %c0_11 = arith.constant 0 : index
    %13 = vector.load %arg6[%c0_10, %c0_11] : memref<128x128xf32, #tpu.memory_space<vmem>>, vector<128x128xf32>
    %cst_12 = arith.constant dense<0.000000e+00> : vector<16x128xf32>
    %14 = tpu.matmul %12, %13, %cst_12 {dimension_numbers = #tpu.dot_dimension_numbers<[1], [0], [0], [1], [0, 0, 1, 1], [], []>} : vector<16x128xf32>, vector<128x128xf32>, vector<16x128xf32> -> vector<16x128xf32>
    %c0_13 = arith.constant 0 : index
    %c0_14 = arith.constant 0 : index
    %15 = vector.load %arg7[%c0_13, %c0_14] : memref<1x128xf32, #tpu.memory_space<vmem>>, vector<1x128xf32>
    %16 = vector.broadcast %15 : vector<1x128xf32> to vector<16x128xf32>
    %17 = arith.addf %14, %16 : vector<16x128xf32>
    %c0_15 = arith.constant 0 : index
    %c0_16 = arith.constant 0 : index
    %18 = vector.load %arg8[%c0_15, %c0_16] : memref<16x128xf32, #tpu.memory_space<vmem>>, vector<16x128xf32>
    tpu.vector_store %arg8[%c0_15, %c0_16], %17 {strides = array<i32>} : memref<16x128xf32, #tpu.memory_space<vmem>>, vector<16x128xf32>,
    return
  }
  func.func @transform_0(%arg0: i32) -> (i32, i32) {
    %c0_i32 = arith.constant 0 : i32
    %c0_i32_0 = arith.constant 0 : i32
    return %arg0, %c0_i32 : i32, i32
  }
  func.func @transform_1(%arg0: i32) -> (i32, i32) {
    %c0_i32 = arith.constant 0 : i32
    %c0_i32_0 = arith.constant 0 : i32
    %c0_i32_1 = arith.constant 0 : i32
    return %c0_i32, %c0_i32_0 : i32, i32
  }
  func.func @transform_2(%arg0: i32) -> (i32, i32) {
    %c0_i32 = arith.constant 0 : i32
    %c0_i32_0 = arith.constant 0 : i32
    %c0_i32_1 = arith.constant 0 : i32
    return %c0_i32, %c0_i32_0 : i32, i32
  }
  func.func @transform_3(%arg0: i32) -> (i32, i32) {
    %c0_i32 = arith.constant 0 : i32
    %c0_i32_0 = arith.constant 0 : i32
    %c0_i32_1 = arith.constant 0 : i32
    return %c0_i32, %c0_i32_0 : i32, i32
  }
  func.func @transform_4(%arg0: i32) -> (i32, i32) {
    %c0_i32 = arith.constant 0 : i32
    %c0_i32_0 = arith.constant 0 : i32
    %c0_i32_1 = arith.constant 0 : i32
    return %c0_i32, %c0_i32_0 : i32, i32
  }
  func.func @transform_5(%arg0: i32) -> (i32, i32) {
    %c0_i32 = arith.constant 0 : i32
    %c0_i32_0 = arith.constant 0 : i32
    %c0_i32_1 = arith.constant 0 : i32
    return %c0_i32, %c0_i32_0 : i32, i32
  }
  func.func @transform_6(%arg0: i32) -> (i32, i32) {
    %c0_i32 = arith.constant 0 : i32
    %c0_i32_0 = arith.constant 0 : i32
    %c0_i32_1 = arith.constant 0 : i32
    return %c0_i32, %c0_i32_0 : i32, i32
  }
  func.func @transform_7(%arg0: i32) -> (i32, i32) {
    %c0_i32 = arith.constant 0 : i32
    %c0_i32_0 = arith.constant 0 : i32
    return %arg0, %c0_i32 : i32, i32
  }
}

</mosaic_0001>

<bundles_post_ra>
// kernel: tpu_custom_call.1
= control target key start
LH: loop header
LB: loop body
LE: loop exit
PB: predicated region body
PF: predicated region fallthrough
CT: control target
= control target key end

     0   :  { %12 = vsyncpa [#allocation3], 0  ;;  %s496_s0 = inlined_call_operand.hbm [shape: f32[16,128], index: 0, kind: input, shape index: {}]   ;;  %s497_s1 = inlined_call_operand.hbm [shape: f32[128,128], index: 1, kind: input, shape index: {}]   ;;  %s498_s2 = inlined_call_operand.vmem [shape: f32[1,128], index: 2, kind: input, shape index: {}]   ;;  %s499_s3 = inlined_call_operand.hbm [shape: f32[128,128], index: 3, kind: input, shape index: {}]   ;;  %s500_s4 = inlined_call_operand.vmem [shape: f32[1,128], index: 4, kind: input, shape index: {}]   ;;  %s501_s5 = inlined_call_operand.hbm [shape: f32[128,128], index: 5, kind: input, shape index: {}]   ;;  %s502_s6 = inlined_call_operand.vmem [shape: f32[1,128], index: 6, kind: input, shape index: {}]   ;;  %s503_s7 = inlined_call_operand.hbm [shape: f32[16,128], index: 7, kind: output, shape index: {}]  }
   0x1   :  { %13 = vsyncpa [#allocation6], 0 }
   0x2   :  { %14 = vsyncpa [#allocation9], 0 }
   0x3   :  { %15 = vsyncpa [#allocation4], 0  ;;  %s33_s26 = sshll.u32 %s497_s1, 4  ;;  %s410_s27 = smov [#allocation5]   ;;  %s34_s26 = int_to_ptr.hbm [resolvable:$true] %s33_s26 }
   0x4   :  { %s35_s28 = sshll.u32 %s410_s27, 4  ;;  %s20_s8 = sshll.u32 %s496_s0, 4  ;;  %s36_s28 = int_to_ptr.vmem [resolvable:$true] %s35_s28  ;;  %s21_s8 = int_to_ptr.hbm [resolvable:$true] %s20_s8 }
   0x5   :  { %s411_s9 = smov 128   ;;  %s412_s10 = smov 8  }
   0x6   :  { %41 = dma.hbm_to_vmem [thread:$0]  %s34_s26, 2048, %s36_s28, [#allocation6], %s411_s9, %s411_s9, %s412_s10  }
   0x7   :  { %s413_s11 = smov [#allocation2]   ;;  %s48_s1 = sshll.u32 %s499_s3, 4  ;;  %s49_s1 = int_to_ptr.hbm [resolvable:$true] %s48_s1 }
   0x8   :  { %s22_s12 = sshll.u32 %s413_s11, 4  ;;  %s63_s16 = sshll.u32 %s501_s5, 4  ;;  %s23_s12 = int_to_ptr.vmem [resolvable:$true] %s22_s12  ;;  %s64_s16 = int_to_ptr.hbm [resolvable:$true] %s63_s16 }
   0x9   :  { %28 = dma.hbm_to_vmem [thread:$0]  %s21_s8, 256, %s23_s12, [#allocation3], %s411_s9, %s411_s9, %s412_s10  }
   0xa   :  { %s414_s17 = smov [#allocation7]   ;;  %s415_s19 = smov [#allocation8]  }
   0xb   :  { %s50_s18 = sshll.u32 %s414_s17, 4  ;;  %s65_s3 = sshll.u32 %s415_s19, 4  ;;  %s51_s18 = int_to_ptr.vmem [resolvable:$true] %s50_s18  ;;  %s66_s3 = int_to_ptr.vmem [resolvable:$true] %s65_s3 }
   0xc   :  { %56 = dma.hbm_to_vmem [thread:$0]  %s49_s1, 2048, %s51_s18, [#allocation6], %s411_s9, %s411_s9, %s412_s10  }
   0xd   :  { %71 = dma.hbm_to_vmem [thread:$0]  %s64_s16, 2048, %s66_s3, [#allocation9], %s411_s9, %s411_s9, %s412_s10  }
   0xe   :  { %402 = dma.done.wait [#allocation3], 256  }
   0xf   :  { %403 = vsyncadd [#allocation3], 4294967040 }
  0x10   :  { %404 = dma.done.wait [#allocation6], 4096  }
  0x11   :  { %405 = vsyncadd [#allocation6], 4294963200 }
  0x12   :  { %406 = dma.done.wait [#allocation9], 2048  }
  0x13   :  { %407 = vsyncadd [#allocation9], 4294965248  ;;  %v107_v0 = vld [vmem:[#allocation5 + $0x78] sm:$0xff]  ;;  %v106_v1 = vld [vmem:[#allocation5 + $0x70] sm:$0xff]  ;;  %s416_s24 = smov [#allocation10]   ;;  %s233_s27 = sshll.u32 %s503_s7, 4  ;;  %s234_s27 = int_to_ptr.hbm [resolvable:$true] %s233_s27 }
  0x14   :  { %112 = vmatpush.msra.mxu0 %v107_v0  ;;  %248 = vmatpush.msra.mxu3 %v107_v0  ;;  %v105_v2 = vld [vmem:[#allocation5 + $0x68] sm:$0xff]  ;;  %v104_v3 = vld [vmem:[#allocation5 + $0x60] sm:$0xff]  ;;  %v103_v4 = vld [vmem:[#allocation5 + $0x58] sm:$0xff]  ;;  %s231_s25 = sshll.u32 %s416_s24, 4  ;;  %s232_s25 = int_to_ptr.vmem [resolvable:$true] %s231_s25 }
  0x15   :  { %v152_v5 = vld [vmem:[#allocation7 + $0x78] sm:$0xff]  ;;  %v151_v6 = vld [vmem:[#allocation7 + $0x70] sm:$0xff]  ;;  %v150_v8 = vld [vmem:[#allocation7 + $0x68] sm:$0xff] }
  0x16   :  { %113 = vmatpush.msra.mxu0 %v106_v1  ;;  %249 = vmatpush.msra.mxu3 %v106_v1  ;;  %v102_v7 = vld [vmem:[#allocation5 + $0x50] sm:$0xff]  ;;  %v101_v9 = vld [vmem:[#allocation5 + $0x48] sm:$0xff]  ;;  %v149_v10 = vld [vmem:[#allocation7 + $0x60] sm:$0xff] }
  0x17   :  { %157 = vmatpush.msra.mxu1 %v152_v5  ;;  %v100_v11 = vld [vmem:[#allocation5 + $0x40] sm:$0xff]  ;;  %v148_v12 = vld [vmem:[#allocation7 + $0x58] sm:$0xff]  ;;  %v147_v14 = vld [vmem:[#allocation7 + $0x50] sm:$0xff] }
  0x18   :  { %114 = vmatpush.msra.mxu0 %v105_v2  ;;  %250 = vmatpush.msra.mxu3 %v105_v2  ;;  %v99_v13 = vld [vmem:[#allocation5 + $0x38] sm:$0xff]  ;;  %v98_v15 = vld [vmem:[#allocation5 + $0x30] sm:$0xff]  ;;  %v146_v16 = vld [vmem:[#allocation7 + $0x48] sm:$0xff] }
  0x19   :  { %158 = vmatpush.msra.mxu1 %v151_v6  ;;  %v97_v17 = vld [vmem:[#allocation5 + $0x28] sm:$0xff]  ;;  %v145_v18 = vld [vmem:[#allocation7 + $0x40] sm:$0xff]  ;;  %v144_v20 = vld [vmem:[#allocation7 + $0x38] sm:$0xff] }
  0x1a   :  { %115 = vmatpush.msra.mxu0 %v104_v3  ;;  %251 = vmatpush.msra.mxu3 %v104_v3  ;;  %v96_v19 = vld [vmem:[#allocation5 + $0x20] sm:$0xff]  ;;  %v95_v21 = vld [vmem:[#allocation5 + $0x18] sm:$0xff]  ;;  %v143_v22 = vld [vmem:[#allocation7 + $0x30] sm:$0xff] }
  0x1b   :  { %159 = vmatpush.msra.mxu1 %v150_v8  ;;  %v94_v23 = vld [vmem:[#allocation5 + $0x10] sm:$0xff]  ;;  %v142_v24 = vld [vmem:[#allocation7 + $0x28] sm:$0xff]  ;;  %v92_v26 = vld [vmem:[#allocation5] sm:$0xff] }
  0x1c   :  { %116 = vmatpush.msra.mxu0 %v103_v4  ;;  %252 = vmatpush.msra.mxu3 %v103_v4  ;;  %v93_v25 = vld [vmem:[#allocation5 + $0x8] sm:$0xff]  ;;  %v90_v27 = vld [vmem:[#allocation2] sm:$0xff]  ;;  %v91_v28 = vld [vmem:[#allocation2 + $0x8] sm:$0xff] }
  0x1d   :  { %160 = vmatpush.msra.mxu1 %v149_v10  ;;  %v141_v29 = vld [vmem:[#allocation7 + $0x20] sm:$0xff]  ;;  %v140_v30 = vld [vmem:[#allocation7 + $0x18] sm:$0xff]  ;;  %v139_v31 = vld [vmem:[#allocation7 + $0x10] sm:$0xff] }
  0x1e   :  { %117 = vmatpush.msra.mxu0 %v102_v7  ;;  %253 = vmatpush.msra.mxu3 %v102_v7  ;;  %v138_v32 = vld [vmem:[#allocation7 + $0x8] sm:$0xff]  ;;  %v137_v33 = vld [vmem:[#allocation7] sm:$0xff]  ;;  %v197_v34 = vld [vmem:[#allocation8 + $0x78] sm:$0xff] }
  0x1f   :  { %161 = vmatpush.msra.mxu1 %v148_v12  ;;  %v196_v35 = vld [vmem:[#allocation8 + $0x70] sm:$0xff]  ;;  %202 = vmatpush.msra.mxu2 %v197_v34  ;;  %v195_v36 = vld [vmem:[#allocation8 + $0x68] sm:$0xff]  ;;  %v194_v37 = vld [vmem:[#allocation8 + $0x60] sm:$0xff] }
  0x20   :  { %118 = vmatpush.msra.mxu0 %v101_v9  ;;  %254 = vmatpush.msra.mxu3 %v101_v9  ;;  %v193_v38 = vld [vmem:[#allocation8 + $0x58] sm:$0xff]  ;;  %v192_v39 = vld [vmem:[#allocation8 + $0x50] sm:$0xff]  ;;  %v191_v40 = vld [vmem:[#allocation8 + $0x48] sm:$0xff] }
  0x21   :  { %162 = vmatpush.msra.mxu1 %v147_v14  ;;  %203 = vmatpush.msra.mxu2 %v196_v35  ;;  %v271_v41 = vld [vmem:[%s498_s2] ss:$0 sm:$0xff]  ;;  %v190_v42 = vld [vmem:[#allocation8 + $0x40] sm:$0xff]  ;;  %v189_v44 = vld [vmem:[#allocation8 + $0x38] sm:$0xff] }
  0x22   :  { %119 = vmatpush.msra.mxu0 %v100_v11  ;;  %255 = vmatpush.msra.mxu3 %v100_v11  ;;  %v188_v46 = vld [vmem:[#allocation8 + $0x30] sm:$0xff]  ;;  %v187_v47 = vld [vmem:[#allocation8 + $0x28] sm:$0xff]  ;;  %v186_v52 = vld [vmem:[#allocation8 + $0x20] sm:$0xff] }
  0x23   :  { %163 = vmatpush.msra.mxu1 %v146_v16  ;;  %204 = vmatpush.msra.mxu2 %v195_v36  ;;  %v185_v53 = vld [vmem:[#allocation8 + $0x18] sm:$0xff]  ;;  %v184_v54 = vld [vmem:[#allocation8 + $0x10] sm:$0xff]  ;;  %v183_v55 = vld [vmem:[#allocation8 + $0x8] sm:$0xff] }
  0x24   :  { %120 = vmatpush.msra.mxu0 %v99_v13  ;;  %256 = vmatpush.msra.mxu3 %v99_v13  ;;  %v182_v56 = vld [vmem:[#allocation8] sm:$0xff]  ;;  %v272_v57 = vld [vmem:[%s500_s4] ss:$0 sm:$0xff] }
  0x25   :  { %164 = vmatpush.msra.mxu1 %v145_v18  ;;  %205 = vmatpush.msra.mxu2 %v194_v37  ;;  %v273_v0 = vld [vmem:[%s502_s6] ss:$0 sm:$0xff] }
  0x26   :  { %121 = vmatpush.msra.mxu0 %v98_v15  ;;  %257 = vmatpush.msra.mxu3 %v98_v15 }
  0x27   :  { %165 = vmatpush.msra.mxu1 %v144_v20  ;;  %206 = vmatpush.msra.mxu2 %v193_v38 }
  0x28   :  { %122 = vmatpush.msra.mxu0 %v97_v17  ;;  %258 = vmatpush.msra.mxu3 %v97_v17 }
  0x29   :  { %166 = vmatpush.msra.mxu1 %v143_v22  ;;  %207 = vmatpush.msra.mxu2 %v192_v39 }
  0x2a   :  { %123 = vmatpush.msra.mxu0 %v96_v19  ;;  %259 = vmatpush.msra.mxu3 %v96_v19 }
  0x2b   :  { %167 = vmatpush.msra.mxu1 %v142_v24  ;;  %208 = vmatpush.msra.mxu2 %v191_v40 }
  0x2c   :  { %124 = vmatpush.msra.mxu0 %v95_v21  ;;  %260 = vmatpush.msra.mxu3 %v95_v21 }
  0x2d   :  { %168 = vmatpush.msra.mxu1 %v141_v29  ;;  %209 = vmatpush.msra.mxu2 %v190_v42 }
  0x2e   :  { %125 = vmatpush.msra.mxu0 %v94_v23  ;;  %261 = vmatpush.msra.mxu3 %v94_v23 }
  0x2f   :  { %169 = vmatpush.msra.mxu1 %v140_v30  ;;  %210 = vmatpush.msra.mxu2 %v189_v44 }
  0x30   :  { %126 = vmatpush.msra.mxu0 %v93_v25  ;;  %262 = vmatpush.msra.mxu3 %v93_v25 }
  0x31   :  { %170 = vmatpush.msra.mxu1 %v139_v31  ;;  %211 = vmatpush.msra.mxu2 %v188_v46 }
  0x32   :  { %127 = vmatpush.msra.mxu0 %v92_v26  ;;  %263 = vmatpush.msra.mxu3 %v92_v26 }
  0x33   :  { %128 = vmatmul.f32.vlgmr.msra.gmra.mxu0 %v90_v27  ;;  %131 = vmatmul.f32.vlgmr.msra.gmra.mxu3 %v91_v28 }
  0x34   :  { %171 = vmatpush.msra.mxu1 %v138_v32  ;;  %212 = vmatpush.msra.mxu2 %v187_v47 }
  0x36   :  { %172 = vmatpush.msra.mxu1 %v137_v33  ;;  %213 = vmatpush.msra.mxu2 %v186_v52 }
  0x38   :  { %214 = vmatpush.msra.mxu2 %v185_v53 }
  0x3a   :  { %215 = vmatpush.msra.mxu2 %v184_v54 }
  0x3c   :  { %216 = vmatpush.msra.mxu2 %v183_v55 }
  0x3e   :  { %217 = vmatpush.msra.mxu2 %v182_v56 }
  0xb0   :  { %v129_v43 = vpop.f32.mrf.mxu0 }
  0xb1   :  { %v130_v45 = vadd.f32 %v271_v41, %v129_v43 }
  0xb3   :  { %274 = vtanh.f32 %v130_v45 }
  0xb6   :  { %v132_v48 = vpop.f32.mrf.mxu3 }
  0xb7   :  { %v133_v49 = vadd.f32 %v271_v41, %v132_v48 }
  0xb9   :  { %v275_v50 = vpop.eup %274  ;;  %276 = vtanh.f32 %v133_v49 }
  0xba   :  { %173 = vmatmul.f32.vlgmr.msra.gmra.mxu1 %v275_v50 }
  0xbf   :  { %v277_v51 = vpop.eup %276 }
  0xc2   :  { %176 = vmatmul.f32.gmra.mxu1 %v277_v51 }
 0x137   :  { %v174_v58 = vpop.f32.mrf.mxu1 }
 0x138   :  { %v175_v59 = vadd.f32 %v272_v57, %v174_v58 }
 0x13a   :  { %278 = vtanh.f32 %v175_v59 }
 0x13f   :  { %v177_v60 = vpop.f32.mrf.mxu1 }
 0x140   :  { %v279_v61 = vpop.eup %278  ;;  %v178_v62 = vadd.f32 %v272_v57, %v177_v60 }
 0x141   :  { %218 = vmatmul.f32.vlgmr.msra.gmra.mxu2 %v279_v61 }
 0x142   :  { %280 = vtanh.f32 %v178_v62 }
 0x148   :  { %v281_v63 = vpop.eup %280 }
 0x149   :  { %221 = vmatmul.f32.gmra.mxu2 %v281_v63 }
 0x1c4   :  { %v219_v1 = vpop.f32.mrf.mxu2 }
 0x1c5   :  { %v220_v2 = vadd.f32 %v273_v0, %v219_v1 }
 0x1c7   :  { %225 = vst [vmem:[#allocation10] sm:$0xff] %v220_v2 }
 0x1cc   :  { %v222_v3 = vpop.f32.mrf.mxu2 }
 0x1cd   :  { %v223_v4 = vadd.f32 %v273_v0, %v222_v3 }
 0x1cf   :  { %226 = vst [vmem:[#allocation10 + $0x8] sm:$0xff] %v223_v4 }
 0x1d0   :  { %239 = dma.vmem_to_hbm [thread:$0]  %s232_s25, 256, %s234_s27, [#allocation4], %s411_s9, %s411_s9, %s412_s10  }
 0x1d1   :  { %408 = dma.done.wait [#allocation4], 256  }
 0x1d2   :  { %409 = vsyncadd [#allocation4], 4294967040 }
 0x1d3   :  { %244 = vsyncpa [#allocation3], 1 }
 0x1d4   :  { %245 = vsyncpa [#allocation6], 1 }
 0x1d5   :  { %246 = vsyncpa [#allocation9], 1 }
 0x1d6   :  { %247 = vsyncpa [#allocation4], 1 }

// kernel: tpu_custom_call.1
= control target key start
LH: loop header
LB: loop body
LE: loop exit
PB: predicated region body
PF: predicated region fallthrough
CT: control target
= control target key end

     0   :  { %12 = vsyncpa [#allocation3], 0  ;;  %s496_s0 = inlined_call_operand.hbm [shape: f32[16,128], index: 0, kind: input, shape index: {}]   ;;  %s497_s1 = inlined_call_operand.hbm [shape: f32[128,128], index: 1, kind: input, shape index: {}]   ;;  %s498_s2 = inlined_call_operand.vmem [shape: f32[1,128], index: 2, kind: input, shape index: {}]   ;;  %s499_s3 = inlined_call_operand.hbm [shape: f32[128,128], index: 3, kind: input, shape index: {}]   ;;  %s500_s4 = inlined_call_operand.vmem [shape: f32[1,128], index: 4, kind: input, shape index: {}]   ;;  %s501_s5 = inlined_call_operand.hbm [shape: f32[128,128], index: 5, kind: input, shape index: {}]   ;;  %s502_s6 = inlined_call_operand.vmem [shape: f32[1,128], index: 6, kind: input, shape index: {}]   ;;  %s503_s7 = inlined_call_operand.hbm [shape: f32[16,128], index: 7, kind: output, shape index: {}]  }
   0x1   :  { %13 = vsyncpa [#allocation6], 0 }
   0x2   :  { %14 = vsyncpa [#allocation9], 0 }
   0x3   :  { %15 = vsyncpa [#allocation4], 0  ;;  %s33_s26 = sshll.u32 %s497_s1, 4  ;;  %s410_s27 = smov [#allocation5]   ;;  %s34_s26 = int_to_ptr.hbm [resolvable:$true] %s33_s26 }
   0x4   :  { %s35_s28 = sshll.u32 %s410_s27, 4  ;;  %s20_s8 = sshll.u32 %s496_s0, 4  ;;  %s36_s28 = int_to_ptr.vmem [resolvable:$true] %s35_s28  ;;  %s21_s8 = int_to_ptr.hbm [resolvable:$true] %s20_s8 }
   0x5   :  { %s411_s9 = smov 128   ;;  %s412_s10 = smov 8  }
   0x6   :  { %41 = dma.hbm_to_vmem [thread:$0]  %s34_s26, 2048, %s36_s28, [#allocation6], %s411_s9, %s411_s9, %s412_s10  }
   0x7   :  { %s413_s11 = smov [#allocation2]   ;;  %s48_s1 = sshll.u32 %s499_s3, 4  ;;  %s49_s1 = int_to_ptr.hbm [resolvable:$true] %s48_s1 }
   0x8   :  { %s22_s12 = sshll.u32 %s413_s11, 4  ;;  %s63_s16 = sshll.u32 %s501_s5, 4  ;;  %s23_s12 = int_to_ptr.vmem [resolvable:$true] %s22_s12  ;;  %s64_s16 = int_to_ptr.hbm [resolvable:$true] %s63_s16 }
   0x9   :  { %28 = dma.hbm_to_vmem [thread:$0]  %s21_s8, 256, %s23_s12, [#allocation3], %s411_s9, %s411_s9, %s412_s10  }
   0xa   :  { %s414_s17 = smov [#allocation7]   ;;  %s415_s19 = smov [#allocation8]  }
   0xb   :  { %s50_s18 = sshll.u32 %s414_s17, 4  ;;  %s65_s3 = sshll.u32 %s415_s19, 4  ;;  %s51_s18 = int_to_ptr.vmem [resolvable:$true] %s50_s18  ;;  %s66_s3 = int_to_ptr.vmem [resolvable:$true] %s65_s3 }
   0xc   :  { %56 = dma.hbm_to_vmem [thread:$0]  %s49_s1, 2048, %s51_s18, [#allocation6], %s411_s9, %s411_s9, %s412_s10  }
   0xd   :  { %71 = dma.hbm_to_vmem [thread:$0]  %s64_s16, 2048, %s66_s3, [#allocation9], %s411_s9, %s411_s9, %s412_s10  }
   0xe   :  { %402 = dma.done.wait [#allocation3], 256  }
   0xf   :  { %403 = vsyncadd [#allocation3], 4294967040 }
  0x10   :  { %404 = dma.done.wait [#allocation6], 4096  }
  0x11   :  { %405 = vsyncadd [#allocation6], 4294963200 }
  0x12   :  { %406 = dma.done.wait [#allocation9], 2048  }
  0x13   :  { %407 = vsyncadd [#allocation9], 4294965248  ;;  %v107_v0 = vld [vmem:[#allocation5 + $0x78] sm:$0xff]  ;;  %v106_v1 = vld [vmem:[#allocation5 + $0x70] sm:$0xff]  ;;  %s416_s24 = smov [#allocation10]   ;;  %s233_s27 = sshll.u32 %s503_s7, 4  ;;  %s234_s27 = int_to_ptr.hbm [resolvable:$true] %s233_s27 }
  0x14   :  { %112 = vmatpush.msra.mxu0 %v107_v0  ;;  %248 = vmatpush.msra.mxu3 %v107_v0  ;;  %v105_v2 = vld [vmem:[#allocation5 + $0x68] sm:$0xff]  ;;  %v104_v3 = vld [vmem:[#allocation5 + $0x60] sm:$0xff]  ;;  %v103_v4 = vld [vmem:[#allocation5 + $0x58] sm:$0xff]  ;;  %s231_s25 = sshll.u32 %s416_s24, 4  ;;  %s232_s25 = int_to_ptr.vmem [resolvable:$true] %s231_s25 }
  0x15   :  { %v152_v5 = vld [vmem:[#allocation7 + $0x78] sm:$0xff]  ;;  %v151_v6 = vld [vmem:[#allocation7 + $0x70] sm:$0xff]  ;;  %v150_v8 = vld [vmem:[#allocation7 + $0x68] sm:$0xff] }
  0x16   :  { %113 = vmatpush.msra.mxu0 %v106_v1  ;;  %249 = vmatpush.msra.mxu3 %v106_v1  ;;  %v102_v7 = vld [vmem:[#allocation5 + $0x50] sm:$0xff]  ;;  %v101_v9 = vld [vmem:[#allocation5 + $0x48] sm:$0xff]  ;;  %v149_v10 = vld [vmem:[#allocation7 + $0x60] sm:$0xff] }
  0x17   :  { %157 = vmatpush.msra.mxu1 %v152_v5  ;;  %v100_v11 = vld [vmem:[#allocation5 + $0x40] sm:$0xff]  ;;  %v148_v12 = vld [vmem:[#allocation7 + $0x58] sm:$0xff]  ;;  %v147_v14 = vld [vmem:[#allocation7 + $0x50] sm:$0xff] }
  0x18   :  { %114 = vmatpush.msra.mxu0 %v105_v2  ;;  %250 = vmatpush.msra.mxu3 %v105_v2  ;;  %v99_v13 = vld [vmem:[#allocation5 + $0x38] sm:$0xff]  ;;  %v98_v15 = vld [vmem:[#allocation5 + $0x30] sm:$0xff]  ;;  %v146_v16 = vld [vmem:[#allocation7 + $0x48] sm:$0xff] }
  0x19   :  { %158 = vmatpush.msra.mxu1 %v151_v6  ;;  %v97_v17 = vld [vmem:[#allocation5 + $0x28] sm:$0xff]  ;;  %v145_v18 = vld [vmem:[#allocation7 + $0x40] sm:$0xff]  ;;  %v144_v20 = vld [vmem:[#allocation7 + $0x38] sm:$0xff] }
  0x1a   :  { %115 = vmatpush.msra.mxu0 %v104_v3  ;;  %251 = vmatpush.msra.mxu3 %v104_v3  ;;  %v96_v19 = vld [vmem:[#allocation5 + $0x20] sm:$0xff]  ;;  %v95_v21 = vld [vmem:[#allocation5 + $0x18] sm:$0xff]  ;;  %v143_v22 = vld [vmem:[#allocation7 + $0x30] sm:$0xff] }
  0x1b   :  { %159 = vmatpush.msra.mxu1 %v150_v8  ;;  %v94_v23 = vld [vmem:[#allocation5 + $0x10] sm:$0xff]  ;;  %v142_v24 = vld [vmem:[#allocation7 + $0x28] sm:$0xff]  ;;  %v92_v26 = vld [vmem:[#allocation5] sm:$0xff] }
  0x1c   :  { %116 = vmatpush.msra.mxu0 %v103_v4  ;;  %252 = vmatpush.msra.mxu3 %v103_v4  ;;  %v93_v25 = vld [vmem:[#allocation5 + $0x8] sm:$0xff]  ;;  %v90_v27 = vld [vmem:[#allocation2] sm:$0xff]  ;;  %v91_v28 = vld [vmem:[#allocation2 + $0x8] sm:$0xff] }
  0x1d   :  { %160 = vmatpush.msra.mxu1 %v149_v10  ;;  %v141_v29 = vld [vmem:[#allocation7 + $0x20] sm:$0xff]  ;;  %v140_v30 = vld [vmem:[#allocation7 + $0x18] sm:$0xff]  ;;  %v139_v31 = vld [vmem:[#allocation7 + $0x10] sm:$0xff] }
  0x1e   :  { %117 = vmatpush.msra.mxu0 %v102_v7  ;;  %253 = vmatpush.msra.mxu3 %v102_v7  ;;  %v138_v32 = vld [vmem:[#allocation7 + $0x8] sm:$0xff]  ;;  %v137_v33 = vld [vmem:[#allocation7] sm:$0xff]  ;;  %v197_v34 = vld [vmem:[#allocation8 + $0x78] sm:$0xff] }
  0x1f   :  { %161 = vmatpush.msra.mxu1 %v148_v12  ;;  %v196_v35 = vld [vmem:[#allocation8 + $0x70] sm:$0xff]  ;;  %202 = vmatpush.msra.mxu2 %v197_v34  ;;  %v195_v36 = vld [vmem:[#allocation8 + $0x68] sm:$0xff]  ;;  %v194_v37 = vld [vmem:[#allocation8 + $0x60] sm:$0xff] }
  0x20   :  { %118 = vmatpush.msra.mxu0 %v101_v9  ;;  %254 = vmatpush.msra.mxu3 %v101_v9  ;;  %v193_v38 = vld [vmem:[#allocation8 + $0x58] sm:$0xff]  ;;  %v192_v39 = vld [vmem:[#allocation8 + $0x50] sm:$0xff]  ;;  %v191_v40 = vld [vmem:[#allocation8 + $0x48] sm:$0xff] }
  0x21   :  { %162 = vmatpush.msra.mxu1 %v147_v14  ;;  %203 = vmatpush.msra.mxu2 %v196_v35  ;;  %v271_v41 = vld [vmem:[%s498_s2] ss:$0 sm:$0xff]  ;;  %v190_v42 = vld [vmem:[#allocation8 + $0x40] sm:$0xff]  ;;  %v189_v44 = vld [vmem:[#allocation8 + $0x38] sm:$0xff] }
  0x22   :  { %119 = vmatpush.msra.mxu0 %v100_v11  ;;  %255 = vmatpush.msra.mxu3 %v100_v11  ;;  %v188_v46 = vld [vmem:[#allocation8 + $0x30] sm:$0xff]  ;;  %v187_v47 = vld [vmem:[#allocation8 + $0x28] sm:$0xff]  ;;  %v186_v52 = vld [vmem:[#allocation8 + $0x20] sm:$0xff] }
  0x23   :  { %163 = vmatpush.msra.mxu1 %v146_v16  ;;  %204 = vmatpush.msra.mxu2 %v195_v36  ;;  %v185_v53 = vld [vmem:[#allocation8 + $0x18] sm:$0xff]  ;;  %v184_v54 = vld [vmem:[#allocation8 + $0x10] sm:$0xff]  ;;  %v183_v55 = vld [vmem:[#allocation8 + $0x8] sm:$0xff] }
  0x24   :  { %120 = vmatpush.msra.mxu0 %v99_v13  ;;  %256 = vmatpush.msra.mxu3 %v99_v13  ;;  %v182_v56 = vld [vmem:[#allocation8] sm:$0xff]  ;;  %v272_v57 = vld [vmem:[%s500_s4] ss:$0 sm:$0xff] }
  0x25   :  { %164 = vmatpush.msra.mxu1 %v145_v18  ;;  %205 = vmatpush.msra.mxu2 %v194_v37  ;;  %v273_v0 = vld [vmem:[%s502_s6] ss:$0 sm:$0xff] }
  0x26   :  { %121 = vmatpush.msra.mxu0 %v98_v15  ;;  %257 = vmatpush.msra.mxu3 %v98_v15 }
  0x27   :  { %165 = vmatpush.msra.mxu1 %v144_v20  ;;  %206 = vmatpush.msra.mxu2 %v193_v38 }
  0x28   :  { %122 = vmatpush.msra.mxu0 %v97_v17  ;;  %258 = vmatpush.msra.mxu3 %v97_v17 }
  0x29   :  { %166 = vmatpush.msra.mxu1 %v143_v22  ;;  %207 = vmatpush.msra.mxu2 %v192_v39 }
  0x2a   :  { %123 = vmatpush.msra.mxu0 %v96_v19  ;;  %259 = vmatpush.msra.mxu3 %v96_v19 }
  0x2b   :  { %167 = vmatpush.msra.mxu1 %v142_v24  ;;  %208 = vmatpush.msra.mxu2 %v191_v40 }
  0x2c   :  { %124 = vmatpush.msra.mxu0 %v95_v21  ;;  %260 = vmatpush.msra.mxu3 %v95_v21 }
  0x2d   :  { %168 = vmatpush.msra.mxu1 %v141_v29  ;;  %209 = vmatpush.msra.mxu2 %v190_v42 }
  0x2e   :  { %125 = vmatpush.msra.mxu0 %v94_v23  ;;  %261 = vmatpush.msra.mxu3 %v94_v23 }
  0x2f   :  { %169 = vmatpush.msra.mxu1 %v140_v30  ;;  %210 = vmatpush.msra.mxu2 %v189_v44 }
  0x30   :  { %126 = vmatpush.msra.mxu0 %v93_v25  ;;  %262 = vmatpush.msra.mxu3 %v93_v25 }
  0x31   :  { %170 = vmatpush.msra.mxu1 %v139_v31  ;;  %211 = vmatpush.msra.mxu2 %v188_v46 }
  0x32   :  { %127 = vmatpush.msra.mxu0 %v92_v26  ;;  %263 = vmatpush.msra.mxu3 %v92_v26 }
  0x33   :  { %128 = vmatmul.f32.vlgmr.msra.gmra.mxu0 %v90_v27  ;;  %131 = vmatmul.f32.vlgmr.msra.gmra.mxu3 %v91_v28 }
  0x34   :  { %171 = vmatpush.msra.mxu1 %v138_v32  ;;  %212 = vmatpush.msra.mxu2 %v187_v47 }
  0x36   :  { %172 = vmatpush.msra.mxu1 %v137_v33  ;;  %213 = vmatpush.msra.mxu2 %v186_v52 }
  0x38   :  { %214 = vmatpush.msra.mxu2 %v185_v53 }
  0x3a   :  { %215 = vmatpush.msra.mxu2 %v184_v54 }
  0x3c   :  { %216 = vmatpush.msra.mxu2 %v183_v55 }
  0x3e   :  { %217 = vmatpush.msra.mxu2 %v182_v56 }
  0xb0   :  { %v129_v43 = vpop.f32.mrf.mxu0 }
  0xb1   :  { %v130_v45 = vadd.f32 %v271_v41, %v129_v43 }
  0xb3   :  { %274 = vtanh.f32 %v130_v45 }
  0xb6   :  { %v132_v48 = vpop.f32.mrf.mxu3 }
  0xb7   :  { %v133_v49 = vadd.f32 %v271_v41, %v132_v48 }
  0xb9   :  { %v275_v50 = vpop.eup %274  ;;  %276 = vtanh.f32 %v133_v49 }
  0xba   :  { %173 = vmatmul.f32.vlgmr.msra.gmra.mxu1 %v275_v50 }
  0xbf   :  { %v277_v51 = vpop.eup %276 }
  0xc2   :  { %176 = vmatmul.f32.gmra.mxu1 %v277_v51 }
 0x137   :  { %v174_v58 = vpop.f32.mrf.mxu1 }
 0x138   :  { %v175_v59 = vadd.f32 %v272_v57, %v174_v58 }
 0x13a   :  { %278 = vtanh.f32 %v175_v59 }
 0x13f   :  { %v177_v60 = vpop.f32.mrf.mxu1 }
 0x140   :  { %v279_v61 = vpop.eup %278  ;;  %v178_v62 = vadd.f32 %v272_v57, %v177_v60 }
 0x141   :  { %218 = vmatmul.f32.vlgmr.msra.gmra.mxu2 %v279_v61 }
 0x142   :  { %280 = vtanh.f32 %v178_v62 }
 0x148   :  { %v281_v63 = vpop.eup %280 }
 0x149   :  { %221 = vmatmul.f32.gmra.mxu2 %v281_v63 }
 0x1c4   :  { %v219_v1 = vpop.f32.mrf.mxu2 }
 0x1c5   :  { %v220_v2 = vadd.f32 %v273_v0, %v219_v1 }
 0x1c7   :  { %225 = vst [vmem:[#allocation10] sm:$0xff] %v220_v2 }
 0x1cc   :  { %v222_v3 = vpop.f32.mrf.mxu2 }
 0x1cd   :  { %v223_v4 = vadd.f32 %v273_v0, %v222_v3 }
 0x1cf   :  { %226 = vst [vmem:[#allocation10 + $0x8] sm:$0xff] %v223_v4 }
 0x1d0   :  { %239 = dma.vmem_to_hbm [thread:$0]  %s232_s25, 256, %s234_s27, [#allocation4], %s411_s9, %s411_s9, %s412_s10  }
 0x1d1   :  { %408 = dma.done.wait [#allocation4], 256  }
 0x1d2   :  { %409 = vsyncadd [#allocation4], 4294967040 }
 0x1d3   :  { %244 = vsyncpa [#allocation3], 1 }
 0x1d4   :  { %245 = vsyncpa [#allocation6], 1 }
 0x1d5   :  { %246 = vsyncpa [#allocation9], 1 }
 0x1d6   :  { %247 = vsyncpa [#allocation4], 1 }

</bundles_post_ra>
